<compile_context>
chip_gen: v7x
topology: tpu7x:2x2x1
jax: 0.10.0
libtpu: 0.0.40
codegen_flags: <defaults>
</compile_context>

<pallas_src>
import jax
import jax.numpy as jnp
from jax import lax
from jax.experimental import pallas as pl
from jax.experimental.pallas import tpu as pltpu


def ensemble_kernel(x_ref, wt_ref, b_ref, wc_ref, bc_ref, y_ref):
    # logits^T = W . x^T  -> (N, TILE_B): lane-dense along the batch.
    logits_t = lax.dot_general(
        wt_ref[...], x_ref[...],
        dimension_numbers=(((1,), (1,)), ((), ())),   # contract over D
        preferred_element_type=jnp.float32,
    ) + b_ref[...]                                    # (N, 1) broadcasts over lanes

    # sigmoid on the EUP (f32).  ReLU(sigmoid(z)) == sigmoid(z): dropped (no-op).
    xi_t = jax.nn.sigmoid(logits_t)                   # (N, TILE_B)

    # classifier Linear(N, 1) as a VPU multiply + XLU sublane reduction instead of
    # a second MXU pass that would produce a single useful lane.
    y_ref[...] = (jnp.sum(xi_t * wc_ref[...], axis=0, keepdims=True)
                  + bc_ref[0, 0])                     # (1, TILE_B) lane-dense store


def my_ensemble_forward(x, w_stack, b_stack, wc, bc, *, tile_b=512):
    """x:(B,D), w_stack:(D,N), b_stack:(1,N), wc:(N,1), bc:(1,1) -> (B,1)."""
    B, D = x.shape
    N = w_stack.shape[1]

    # Batch tile: whole batch if small, else tile_b rows per grid step.
    tb = B if B <= tile_b else tile_b
    n_tiles = pl.cdiv(B, tb)
    Bp = n_tiles * tb
    xp = jnp.pad(x, ((0, Bp - B), (0, 0))) if Bp != B else x

    # Small operands reshaped for the transposed (lane-dense) layout.
    w_t = w_stack.T                      # (N, D)  resident weight
    b_col = b_stack.reshape(N, 1)        # (N, 1)
    wc_col = wc.reshape(N, 1)            # (N, 1)
    bc_s = bc.reshape(1, 1)              # scalar, lives in SMEM

    y_t = pl.pallas_call(
        ensemble_kernel,
        out_shape=jax.ShapeDtypeStruct((1, Bp), jnp.float32),
        grid_spec=pltpu.PrefetchScalarGridSpec(
            num_scalar_prefetch=0,
            grid=(n_tiles,),
            in_specs=[
                pl.BlockSpec((tb, D), lambda i: (i, 0)),        # x tile (pipelined)
                pl.BlockSpec((N, D), lambda i: (0, 0)),         # W^T (resident)
                pl.BlockSpec((N, 1), lambda i: (0, 0)),         # ensemble biases
                pl.BlockSpec((N, 1), lambda i: (0, 0)),         # classifier weight
                pl.BlockSpec(memory_space=pltpu.MemorySpace.SMEM),  # classifier bias
            ],
            out_specs=pl.BlockSpec((1, tb), lambda i: (0, i)),  # lane-dense output slab
        ),
        compiler_params=pltpu.CompilerParams(
            dimension_semantics=("parallel",),   # batch tiles shard across TCs (v7x)
        ),
    )(xp, w_t, b_col, wc_col, bc_s)

    return y_t[0, :B].reshape(B, 1)


def reference_forward(x, w_stack, b_stack, wc, bc):
    xi = jax.nn.sigmoid(x @ w_stack + b_stack)
    xi = jnp.maximum(xi, 0.0)            # ReLU kept in the reference for fidelity
    return xi @ wc + bc


if __name__ == "__main__":
    key = jax.random.PRNGKey(0)
    B, D, N = 2, 32, 3  # batch, flattened feature dim, number of sub-models

    k_x, k_w, k_b, k_wc, k_bc = jax.random.split(key, 5)
    x = jax.random.normal(k_x, (B, D), dtype=jnp.float32)
    # each sub-model: Linear(D, 1); stack weights as (D, N), biases as (1, N)
    w_stack = jax.random.normal(k_w, (D, N), dtype=jnp.float32) * 0.1
    b_stack = jax.random.normal(k_b, (1, N), dtype=jnp.float32) * 0.1
    # classifier Linear(N, 1)
    wc = jax.random.normal(k_wc, (N, 1), dtype=jnp.float32) * 0.1
    bc = jax.random.normal(k_bc, (1, 1), dtype=jnp.float32) * 0.1

    y = my_ensemble_forward(x, w_stack, b_stack, wc, bc)
    y = jax.block_until_ready(y)

    y_ref = reference_forward(x, w_stack, b_stack, wc, bc)
    assert y.shape == (B, 1)
    assert jnp.allclose(y, y_ref, atol=1e-5, rtol=1e-5)
    print("KERNEL_OK")
</pallas_src>

<mosaic_0001>
module attributes {stable_mosaic.version = 11 : i64} {
  func.func @ensemble_kernel(%arg0: i32, %arg1: memref<2x32xf32, #tpu.memory_space<vmem>>, %arg2: memref<3x32xf32, #tpu.memory_space<vmem>>, %arg3: memref<3x1xf32, #tpu.memory_space<vmem>>, %arg4: memref<3x1xf32, #tpu.memory_space<vmem>>, %arg5: memref<1x1xf32, #tpu.memory_space<smem>>, %arg6: memref<1x2xf32, #tpu.memory_space<vmem>>) attributes {dimension_semantics = [#tpu.dimension_semantics<parallel>], iteration_bounds = array<i64: 1>, scalar_prefetch = 0 : i64, scratch_operands = 0 : i64, tpu.core_type = #tpu.core_type<tc>, window_params = [{transform_indices = @transform_0, window_bounds = array<i64: 2, 32>}, {pipeline_mode = #tpu.pipeline_mode<synchronous>, transform_indices = @transform_1, window_bounds = array<i64: 3, 32>}, {pipeline_mode = #tpu.pipeline_mode<synchronous>, transform_indices = @transform_2, window_bounds = array<i64: 3, 1>}, {pipeline_mode = #tpu.pipeline_mode<synchronous>, transform_indices = @transform_3, window_bounds = array<i64: 3, 1>}, {transform_indices = @transform_4, window_bounds = array<i64: 1, 1>}, {transform_indices = @transform_5, window_bounds = array<i64: 1, 2>}]} {
    %c0 = arith.constant 0 : index
    %c0_0 = arith.constant 0 : index
    %0 = vector.load %arg2[%c0, %c0_0] : memref<3x32xf32, #tpu.memory_space<vmem>>, vector<3x32xf32>
    %c0_1 = arith.constant 0 : index
    %c0_2 = arith.constant 0 : index
    %1 = vector.load %arg1[%c0_1, %c0_2] : memref<2x32xf32, #tpu.memory_space<vmem>>, vector<2x32xf32>
    %cst = arith.constant dense<0.000000e+00> : vector<3x2xf32>
    %2 = tpu.matmul %0, %1, %cst {dimension_numbers = #tpu.dot_dimension_numbers<[1], [1], [0], [0], [0, 0, 1, 0], [], []>} : vector<3x32xf32>, vector<2x32xf32>, vector<3x2xf32> -> vector<3x2xf32>
    %c0_3 = arith.constant 0 : index
    %c0_4 = arith.constant 0 : index
    %3 = vector.load %arg3[%c0_3, %c0_4] : memref<3x1xf32, #tpu.memory_space<vmem>>, vector<3x1xf32>
    %4 = vector.broadcast %3 : vector<3x1xf32> to vector<3x2xf32>
    %5 = arith.addf %2, %4 : vector<3x2xf32>
    %6 = arith.negf %5 : vector<3x2xf32>
    %7 = math.exp %6 : vector<3x2xf32>
    %cst_5 = arith.constant 1.000000e+00 : f32
    %8 = vector.broadcast %cst_5 : f32 to vector<3x2xf32>
    %9 = arith.addf %8, %7 : vector<3x2xf32>
    %10 = arith.divf %8, %9 : vector<3x2xf32>
    %c0_6 = arith.constant 0 : index
    %c0_7 = arith.constant 0 : index
    %11 = vector.load %arg4[%c0_6, %c0_7] : memref<3x1xf32, #tpu.memory_space<vmem>>, vector<3x1xf32>
    %12 = vector.broadcast %11 : vector<3x1xf32> to vector<3x2xf32>
    %13 = arith.mulf %10, %12 : vector<3x2xf32>
    %cst_8 = arith.constant dense<0.000000e+00> : vector<2xf32>
    %14 = vector.multi_reduction <add>, %13, %cst_8 [0] : vector<3x2xf32> to vector<2xf32>
    %15 = vector.shape_cast %14 : vector<2xf32> to vector<1x2xf32>
    %c0_9 = arith.constant 0 : index
    %c0_10 = arith.constant 0 : index
    %16 = memref.load %arg5[%c0_9, %c0_10] : memref<1x1xf32, #tpu.memory_space<smem>>
    %17 = vector.broadcast %16 : f32 to vector<1x2xf32>
    %18 = arith.addf %15, %17 : vector<1x2xf32>
    %c0_11 = arith.constant 0 : index
    %c0_12 = arith.constant 0 : index
    %19 = vector.load %arg6[%c0_11, %c0_12] : memref<1x2xf32, #tpu.memory_space<vmem>>, vector<1x2xf32>
    tpu.vector_store %arg6[%c0_11, %c0_12], %18 {strides = array<i32>} : memref<1x2xf32, #tpu.memory_space<vmem>>, vector<1x2xf32>,
    return
  }
  func.func @transform_0(%arg0: i32) -> (i32, i32) {
    %c0_i32 = arith.constant 0 : i32
    %c0_i32_0 = arith.constant 0 : i32
    return %arg0, %c0_i32 : i32, i32
  }
  func.func @transform_1(%arg0: i32) -> (i32, i32) {
    %c0_i32 = arith.constant 0 : i32
    %c0_i32_0 = arith.constant 0 : i32
    %c0_i32_1 = arith.constant 0 : i32
    return %c0_i32, %c0_i32_0 : i32, i32
  }
  func.func @transform_2(%arg0: i32) -> (i32, i32) {
    %c0_i32 = arith.constant 0 : i32
    %c0_i32_0 = arith.constant 0 : i32
    %c0_i32_1 = arith.constant 0 : i32
    return %c0_i32, %c0_i32_0 : i32, i32
  }
  func.func @transform_3(%arg0: i32) -> (i32, i32) {
    %c0_i32 = arith.constant 0 : i32
    %c0_i32_0 = arith.constant 0 : i32
    %c0_i32_1 = arith.constant 0 : i32
    return %c0_i32, %c0_i32_0 : i32, i32
  }
  func.func @transform_4(%arg0: i32) -> (i32, i32) {
    %c0_i32 = arith.constant 0 : i32
    %c0_i32_0 = arith.constant 0 : i32
    %c0_i32_1 = arith.constant 0 : i32
    return %c0_i32, %c0_i32_0 : i32, i32
  }
  func.func @transform_5(%arg0: i32) -> (i32, i32) {
    %c0_i32 = arith.constant 0 : i32
    %c0_i32_0 = arith.constant 0 : i32
    return %c0_i32, %arg0 : i32, i32
  }
}

</mosaic_0001>

<bundles_post_ra>
// kernel: tpu_custom_call.1
= control target key start
LH: loop header
LB: loop body
LE: loop exit
PB: predicated region body
PF: predicated region fallthrough
CT: control target
= control target key end

     0   :  { %vm30_vm0 = vcmask 261120   ;;  %v190_v1 = vmov 0.0   ;;  %vm191_vm1 = vmmov 0   ;;  %v192_v4 = vmov 0   ;;  %s251_s0 = inlined_call_operand.vmem [shape: f32[2,32], index: 0, kind: input, shape index: {}]   ;;  %s252_s1 = inlined_call_operand.vmem [shape: f32[3,32], index: 1, kind: input, shape index: {}]   ;;  %s253_s2 = inlined_call_operand.vmem [shape: f32[3,1], index: 2, kind: input, shape index: {}]   ;;  %s254_s3 = inlined_call_operand.vmem [shape: f32[3,1], index: 3, kind: input, shape index: {}]   ;;  %s255_s4 = inlined_call_operand.<no memory space> [shape: f32[1,1], index: 4, kind: input, shape index: {}]   ;;  %s256_s5 = inlined_call_operand.hbm [shape: f32[1,2], index: 5, kind: output, shape index: {}]  }
   0x1   :  { %v23_v0 = vld [vmem:[%s251_s0] sm:$0x3]  ;;  %152 = vmatprep.subr.mxu0 %v190_v1  ;;  %154 = vmatprep.mubr.msk.f32.mxu0 %vm191_vm1, %v190_v1 }
   0x2   :  { %v24_v2 = vld [vmem:[%s253_s2] sm:$0x7]  ;;  %153 = vmatpush3.xpose.msk.msra.mxu0 %vm30_vm0, %v23_v0  ;;  %161 = vset.pattern.permute.xlu0 %v192_v4 }
   0x3   :  { %v22_v3 = vld [vmem:[%s252_s1] sm:$0x7] }
   0x4   :  { %11 = vsyncpa [#allocation4], 0  ;;  %27 = vperm.xlu0 %161, %v24_v2   ;;  %v113_v5 = vld [vmem:[%s254_s3] sm:$0x7]  ;;  %vm120_vm2 = vcmask 10240   ;;  %v129_v22 = vstv %s255_s4  ;;  %s193_s3 = smov [#allocation3]  }
   0x5   :  { %155 = vmatmul.mubr.msk.f32.vlgmr.msra.gmra.mrb[0].mxu0 %vm30_vm0, %v22_v3  ;;  %s139_s25 = sshll.u32 %s193_s3, 4  ;;  %vm131_vm3 = vcmask 8192   ;;  %s140_s25 = int_to_ptr.vmem [resolvable:$true] %s139_s25 }
   0x6   :  { %s166_s26 = scalar_lea.vmem %s140_s25, 16  ;;  %s170_s27 = scalar_lea.vmem %s140_s25, 32 }
   0x7   :  { %p167_p0 = scmp.ne.s32.totalorder %s140_s25, %s166_s26  ;;  %p171_p1 = scmp.lt.s32.totalorder %s140_s25, %s140_s25 }
   0x8   :  { %116 = vperm.xlu0 %161, %v113_v5   ;;  %p172_p2 = scmp.lt.s32.totalorder %s170_s27, %s166_s26 }
   0xa   :  { %p173_p3 = por %p172_p2, %p171_p1 }
   0xc   :  { %p174_p4 = pnand %p173_p3, %p167_p0 }
  0x83   :  { %v28_v6 = vpop.permute.xlu0 %27 }
  0x87   :  { %v117_v14 = vpop.permute.xlu0 %116 }
  0xd8   :  { %v103_v7 = vpop.f32.mrb[0].mxu0 }
  0xd9   :  { %v104_v8 = vadd.f32 %v103_v7, %v28_v6  ;;  %v156_v9 = vpop.f32.mrb[1].mxu0 }
  0xdb   :  { %v149_v10 = vmul.f32 -1.442695, %v104_v8 }
  0xdd   :  { %162 = vpow2.f32 %v149_v10 }
  0xe7   :  { %v163_v11 = vpop.eup %162 }
  0xe8   :  { %v110_v12 = vadd.f32 1.0, %v163_v11 }
  0xea   :  { %164 = vrcp.f32 %v110_v12 }
  0xf4   :  { %v165_v13 = vpop.eup %164 }
  0xf5   :  { %v119_v15 = vmul.f32 %v165_v13, %v117_v14 }
  0xf7   :  { %v121_v16 = vsel %vm120_vm2, %v119_v15, 0.0 }
  0xf8   :  { %v122_v17 = vrot.slane %v121_v16, 4 }
  0xfa   :  { %v123_v18 = vadd.f32 %v122_v17, %v121_v16 }
  0xfc   :  { %v124_v19 = vrot.slane %v123_v18, 2 }
  0xfe   :  { %v125_v20 = vadd.f32 %v124_v19, %v123_v18 }
 0x100   :  { %v126_v21 = vrot.slane %v125_v20, 1 }
 0x102   :  { %v127_v23 = vadd.f32 %v126_v21, %v125_v20 }
 0x104   :  { %v130_v24 = vadd.f32 %v129_v22, %v127_v23 }
 0x106   :  { %132 = vst.msk [vmem:[#allocation3] sm:$0x1] %vm131_vm3, %v130_v24 }
 0x107   :  { %177 = shalt.err (!%p174_p4)
}
 0x108   :  { %s178_s30 = scalar_lea.hbm %s256_s5, 16 }
 0x109   :  { %p179_p5 = scmp.ne.s32.totalorder %s256_s5, %s178_s30  ;;  %p182_p6 = scmp.lt.u32.totalorder %s178_s30, %s256_s5 }
 0x10b   :  { %p184_p7 = pnand %p182_p6, %p179_p5 }
 0x10d   :  { %187 = shalt.err (!%p184_p7)
}
 0x10e   :  { %142 = dma.vmem_to_hbm [thread:$0]  %s140_s25, 16, %s256_s5, [#allocation4]  }
 0x10f   :  { %188 = dma.done.wait [#allocation4], 16  }
 0x110   :  { %189 = vsyncadd [#allocation4], 4294967280 }
 0x111   :  { %146 = vsyncpa [#allocation4], 1 }

</bundles_post_ra>
